<compile_context>
chip_gen: v7x
topology: tpu7x:2x2x1
jax: 0.10.0
libtpu: 0.0.40
codegen_flags: <defaults>
</compile_context>

<pallas_src>
import functools
import math

import jax
import jax.numpy as jnp
import numpy as np
from jax.experimental import pallas as pl
from jax.experimental.pallas import tpu as pltpu

_LOG_2PI = math.log(2.0 * math.pi)
_LOGIT_CLAMP = 40.0


def _lgamma_digamma_series(z, log_z, zinv):
    """3-term Stirling / asymptotic series for (lgamma(z), digamma(z)).

    Truncation error < 1.1e-8 absolute for z >= 5 (below f32 epsilon of the
    results).  `log_z` and `zinv` are passed in so callers can share those EUP ops.
    """
    zinv2 = zinv * zinv
    lg = ((z - 0.5) * log_z - z + 0.5 * _LOG_2PI
          + zinv * (1.0 / 12.0 - zinv2 * (1.0 / 360.0 - zinv2 * (1.0 / 1260.0))))
    dg = (log_z - 0.5 * zinv
          - zinv2 * (1.0 / 12.0 - zinv2 * (1.0 / 120.0 - zinv2 * (1.0 / 252.0))))
    return lg, dg


def _lgamma_digamma_shift4(x):
    """Fused (lgamma(x), digamma(x)) for x > 1.

    Four recurrence steps bring the argument to z = x + 4 >= 5 where the series is
    exact at f32.  The shift terms are folded pairwise:
      lgamma:  log x + log(x+1) + log(x+2) + log(x+3)
             = log(x(x+1)) + log((x+2)(x+3))                 (2 EUP logs, not 8)
      digamma: 1/x + 1/(x+1) + 1/(x+2) + 1/(x+3)
             = (2x+1)/(x(x+1)) + (2x+5)/((x+2)(x+3))         (2 EUP divides, not 8)
    log(z) and 1/z are shared between the lgamma and digamma series.
    """
    p0 = x * (x + 1.0)
    p1 = (x + 2.0) * (x + 3.0)
    log_shift = jnp.log(p0) + jnp.log(p1)
    inv_shift = (2.0 * x + 1.0) / p0 + (2.0 * x + 5.0) / p1
    z = x + 4.0
    zinv = 1.0 / z
    log_z = jnp.log(z)
    lg, dg = _lgamma_digamma_series(z, log_z, zinv)
    return lg - log_shift, dg - inv_shift


def _dirichlet_loss_kernel(logits_ref, targets_ref, mask_ref, ml_ref, kl_ref,
                           *, lgamma_num_classes, s_in_asymptotic_regime):
    logits = logits_ref[...].astype(jnp.float32)             # (B, C)
    tgt = targets_ref[...]                                    # (B, 1) int32
    mask = mask_ref[...].astype(jnp.float32)                  # (B, 1)
    B, C = logits.shape

    # Clamp so exp / pairwise products stay finite in f32.  Only affects
    # pathological logits > 40 where the reference loss is astronomically large.
    logits = jnp.minimum(logits, _LOGIT_CLAMP)
    alpha = jnp.exp(logits) + 1.0                             # (B, C), alpha > 1
    S = jnp.sum(alpha, axis=1, keepdims=True)                 # (B, 1), S > C

    # one-hot(targets) via lane iota (no gather); also used to pick alpha[target].
    col = jax.lax.broadcasted_iota(jnp.int32, (B, C), 1)
    one_hot = (col == tgt).astype(jnp.float32)                # (B, C)
    alpha_tgt = jnp.sum(one_hot * alpha, axis=1, keepdims=True)   # (B, 1)

    # S path: one log(S) / 1/S shared by the ML term, lgamma(S) and digamma(S).
    log_S = jnp.log(S)
    inv_S = 1.0 / S
    if s_in_asymptotic_regime:
        lg_S, dg_S = _lgamma_digamma_series(S, log_S, inv_S)  # zero-shift (S >= C)
    else:
        lg_S, dg_S = _lgamma_digamma_shift4(S)                # tiny-num_classes fallback

    # Type II ML loss per sample: log(S) - log(alpha[target]).
    ml = log_S - jnp.log(alpha_tgt)                           # (B, 1)

    # KL(Dir(alpha) || Dir(1)) per sample.
    lg_alpha, dg_alpha = _lgamma_digamma_shift4(alpha)        # (B, C) each
    kl = (lg_S - jnp.sum(lg_alpha, axis=1, keepdims=True) - lgamma_num_classes
          + jnp.sum((alpha - 1.0) * (dg_alpha - dg_S), axis=1, keepdims=True))

    # Masked means (full reduction to (1, 1)), matching the PyTorch 1e-6 epsilon.
    ml_num = jnp.sum(mask * ml, keepdims=True)
    ml_den = jnp.sum(mask, keepdims=True) + 1e-6
    kl_num = jnp.sum((1.0 - mask) * kl, keepdims=True)
    kl_den = jnp.sum(1.0 - mask, keepdims=True) + 1e-6

    ml_ref[...] = ml_num / ml_den
    kl_ref[...] = kl_num / kl_den


def type2_dirichlet_loss(logits, targets, has_prediction, step=None, *,
                         num_classes=100, reg_weight=0.01,
                         warmup_steps=500, max_reg_weight=0.1):
    """Returns (total_loss, mean_ml_loss, mean_kl_div) matching the PyTorch module."""
    B, C = logits.shape
    assert C == num_classes
    tgt2 = targets.astype(jnp.int32).reshape(B, 1)
    mask2 = has_prediction.astype(jnp.float32).reshape(B, 1)

    kernel = functools.partial(
        _dirichlet_loss_kernel,
        lgamma_num_classes=math.lgamma(float(num_classes)),
        s_in_asymptotic_regime=(num_classes >= 8),  # S > num_classes >= 8 -> no shift
    )

    # Advisory cost hint: ~7 transcendentals per (B, C) element (exp, 3 logs,
    # 3 reciprocal-class ops) plus a handful per row.
    cost = pl.CostEstimate(
        flops=int(B * C * 60 + B * 40),
        transcendentals=int(B * C * 7 + B * 3 + 2),
        bytes_accessed=int(4 * B * C + 8 * B + 8),
    )

    mean_ml, mean_kl = pl.pallas_call(
        kernel,
        in_specs=[
            pl.BlockSpec(memory_space=pltpu.MemorySpace.VMEM),
            pl.BlockSpec(memory_space=pltpu.MemorySpace.VMEM),
            pl.BlockSpec(memory_space=pltpu.MemorySpace.VMEM),
        ],
        out_specs=(
            pl.BlockSpec(memory_space=pltpu.MemorySpace.VMEM),
            pl.BlockSpec(memory_space=pltpu.MemorySpace.VMEM),
        ),
        out_shape=(
            jax.ShapeDtypeStruct((1, 1), jnp.float32),
            jax.ShapeDtypeStruct((1, 1), jnp.float32),
        ),
        cost_estimate=cost,
    )(logits.astype(jnp.float32), tgt2, mask2)

    mean_ml = mean_ml[0, 0]
    mean_kl = mean_kl[0, 0]

    # Host-side KL warmup schedule (same as the PyTorch module).
    current_reg_weight = reg_weight
    if step is not None:
        progress = min(1.0, step / warmup_steps)
        current_reg_weight = reg_weight + progress * (max_reg_weight - reg_weight)

    total = mean_ml + current_reg_weight * mean_kl
    return total, mean_ml, mean_kl


def _reference_loss(logits, targets, has_prediction, step=None, *,
                    num_classes=100, reg_weight=0.01,
                    warmup_steps=500, max_reg_weight=0.1):
    """Pure-JAX f32 reference (jax.scipy.special) used to re-validate the
    reduced-shift lgamma/digamma approximations."""
    from jax.scipy.special import digamma, gammaln
    logits = logits.astype(jnp.float32)
    alpha = jnp.exp(logits) + 1.0
    S = alpha.sum(axis=1)
    one_hot = jax.nn.one_hot(targets, num_classes, dtype=jnp.float32)
    ml = jnp.sum(one_hot * (jnp.log(S[:, None]) - jnp.log(alpha)), axis=1)
    kl = (gammaln(S) - gammaln(alpha).sum(axis=1) - math.lgamma(float(num_classes))
          + ((alpha - 1.0) * (digamma(alpha) - digamma(S)[:, None])).sum(axis=1))
    hp = has_prediction.astype(jnp.float32)
    mean_ml = (hp * ml).sum() / (hp.sum() + 1e-6)
    mean_kl = ((1.0 - hp) * kl).sum() / ((1.0 - hp).sum() + 1e-6)
    w = reg_weight
    if step is not None:
        progress = min(1.0, step / warmup_steps)
        w = reg_weight + progress * (max_reg_weight - reg_weight)
    return mean_ml + w * mean_kl, mean_ml, mean_kl


if __name__ == "__main__":
    key = jax.random.PRNGKey(0)
    B, C = 8, 100  # batch=8, num_classes=100 (module default)

    k1, k2, k3 = jax.random.split(key, 3)
    logits = jax.random.normal(k1, (B, C), dtype=jnp.float32)               # number_logits
    targets = jax.random.randint(k2, (B,), 0, C, dtype=jnp.int32)           # (B,)
    has_prediction = (jax.random.uniform(k3, (B,)) > 0.5).astype(jnp.float32)  # (B,)

    total, ml, kl = type2_dirichlet_loss(logits, targets, has_prediction, step=250)
    jax.block_until_ready((total, ml, kl))

    # Re-validate the reduced-shift lgamma/digamma against jax.scipy.special
    # (loose f32 tolerance; both sides see heavy cancellation in the KL term).
    ref_total, ref_ml, ref_kl = _reference_loss(logits, targets, has_prediction, step=250)
    np.testing.assert_allclose(np.array([total, ml, kl]),
                               np.array([ref_total, ref_ml, ref_kl]),
                               rtol=5e-2, atol=5e-2)
    assert bool(jnp.isfinite(total)) and bool(jnp.isfinite(ml)) and bool(jnp.isfinite(kl))

    print("KERNEL_OK")
</pallas_src>

<mosaic_0001>
module attributes {stable_mosaic.version = 11 : i64} {
  func.func @_dirichlet_loss_kernel(%arg0: memref<8x100xf32, #tpu.memory_space<vmem>>, %arg1: memref<8x1xi32, #tpu.memory_space<vmem>>, %arg2: memref<8x1xf32, #tpu.memory_space<vmem>>, %arg3: memref<1x1xf32, #tpu.memory_space<vmem>>, %arg4: memref<1x1xf32, #tpu.memory_space<vmem>>) attributes {dimension_semantics = [], scalar_prefetch = 0 : i64, scratch_operands = 0 : i64, tpu.core_type = #tpu.core_type<tc>} {
    %c0 = arith.constant 0 : index
    %c0_0 = arith.constant 0 : index
    %0 = vector.load %arg0[%c0, %c0_0] : memref<8x100xf32, #tpu.memory_space<vmem>>, vector<8x100xf32>
    %c0_1 = arith.constant 0 : index
    %c0_2 = arith.constant 0 : index
    %1 = vector.load %arg1[%c0_1, %c0_2] : memref<8x1xi32, #tpu.memory_space<vmem>>, vector<8x1xi32>
    %c0_3 = arith.constant 0 : index
    %c0_4 = arith.constant 0 : index
    %2 = vector.load %arg2[%c0_3, %c0_4] : memref<8x1xf32, #tpu.memory_space<vmem>>, vector<8x1xf32>
    %cst = arith.constant 4.000000e+01 : f32
    %3 = vector.broadcast %cst : f32 to vector<8x100xf32>
    %4 = arith.minimumf %0, %3 : vector<8x100xf32>
    %5 = math.exp %4 : vector<8x100xf32>
    %cst_5 = arith.constant 1.000000e+00 : f32
    %6 = vector.broadcast %cst_5 : f32 to vector<8x100xf32>
    %7 = arith.addf %5, %6 : vector<8x100xf32>
    %cst_6 = arith.constant dense<0.000000e+00> : vector<8xf32>
    %8 = vector.multi_reduction <add>, %7, %cst_6 [1] : vector<8x100xf32> to vector<8xf32>
    %9 = vector.shape_cast %8 : vector<8xf32> to vector<8x1xf32>
    %10 = tpu.iota {dimensions = array<i32: 1>} : vector<8x100xi32>
    %11 = vector.broadcast %1 : vector<8x1xi32> to vector<8x100xi32>
    %12 = arith.cmpi eq, %10, %11 : vector<8x100xi32>
    %13 = arith.extui %12 : vector<8x100xi1> to vector<8x100xi32>
    %14 = arith.sitofp %13 : vector<8x100xi32> to vector<8x100xf32>
    %15 = arith.mulf %14, %7 : vector<8x100xf32>
    %cst_7 = arith.constant dense<0.000000e+00> : vector<8xf32>
    %16 = vector.multi_reduction <add>, %15, %cst_7 [1] : vector<8x100xf32> to vector<8xf32>
    %17 = vector.shape_cast %16 : vector<8xf32> to vector<8x1xf32>
    %18 = math.log %9 : vector<8x1xf32>
    %cst_8 = arith.constant 1.000000e+00 : f32
    %19 = vector.broadcast %cst_8 : f32 to vector<8x1xf32>
    %20 = arith.divf %19, %9 : vector<8x1xf32>
    %21 = arith.mulf %20, %20 : vector<8x1xf32>
    %cst_9 = arith.constant 5.000000e-01 : f32
    %22 = vector.broadcast %cst_9 : f32 to vector<8x1xf32>
    %23 = arith.subf %9, %22 : vector<8x1xf32>
    %24 = arith.mulf %23, %18 : vector<8x1xf32>
    %25 = arith.subf %24, %9 : vector<8x1xf32>
    %cst_10 = arith.constant 0.918938517 : f32
    %26 = vector.broadcast %cst_10 : f32 to vector<8x1xf32>
    %27 = arith.addf %25, %26 : vector<8x1xf32>
    %cst_11 = arith.constant 7.93650805E-4 : f32
    %28 = vector.broadcast %cst_11 : f32 to vector<8x1xf32>
    %29 = arith.mulf %21, %28 : vector<8x1xf32>
    %cst_12 = arith.constant 0.00277777785 : f32
    %30 = vector.broadcast %cst_12 : f32 to vector<8x1xf32>
    %31 = arith.subf %30, %29 : vector<8x1xf32>
    %32 = arith.mulf %21, %31 : vector<8x1xf32>
    %cst_13 = arith.constant 0.0833333358 : f32
    %33 = vector.broadcast %cst_13 : f32 to vector<8x1xf32>
    %34 = arith.subf %33, %32 : vector<8x1xf32>
    %35 = arith.mulf %20, %34 : vector<8x1xf32>
    %36 = arith.addf %27, %35 : vector<8x1xf32>
    %cst_14 = arith.constant 5.000000e-01 : f32
    %37 = vector.broadcast %cst_14 : f32 to vector<8x1xf32>
    %38 = arith.mulf %37, %20 : vector<8x1xf32>
    %39 = arith.subf %18, %38 : vector<8x1xf32>
    %cst_15 = arith.constant 0.0039682542 : f32
    %40 = vector.broadcast %cst_15 : f32 to vector<8x1xf32>
    %41 = arith.mulf %21, %40 : vector<8x1xf32>
    %cst_16 = arith.constant 0.00833333377 : f32
    %42 = vector.broadcast %cst_16 : f32 to vector<8x1xf32>
    %43 = arith.subf %42, %41 : vector<8x1xf32>
    %44 = arith.mulf %21, %43 : vector<8x1xf32>
    %cst_17 = arith.constant 0.0833333358 : f32
    %45 = vector.broadcast %cst_17 : f32 to vector<8x1xf32>
    %46 = arith.subf %45, %44 : vector<8x1xf32>
    %47 = arith.mulf %21, %46 : vector<8x1xf32>
    %48 = arith.subf %39, %47 : vector<8x1xf32>
    %49 = math.log %17 : vector<8x1xf32>
    %50 = arith.subf %18, %49 : vector<8x1xf32>
    %cst_18 = arith.constant 1.000000e+00 : f32
    %51 = vector.broadcast %cst_18 : f32 to vector<8x100xf32>
    %52 = arith.addf %7, %51 : vector<8x100xf32>
    %53 = arith.mulf %7, %52 : vector<8x100xf32>
    %cst_19 = arith.constant 2.000000e+00 : f32
    %54 = vector.broadcast %cst_19 : f32 to vector<8x100xf32>
    %55 = arith.addf %7, %54 : vector<8x100xf32>
    %cst_20 = arith.constant 3.000000e+00 : f32
    %56 = vector.broadcast %cst_20 : f32 to vector<8x100xf32>
    %57 = arith.addf %7, %56 : vector<8x100xf32>
    %58 = arith.mulf %55, %57 : vector<8x100xf32>
    %59 = math.log %53 : vector<8x100xf32>
    %60 = math.log %58 : vector<8x100xf32>
    %61 = arith.addf %59, %60 : vector<8x100xf32>
    %cst_21 = arith.constant 2.000000e+00 : f32
    %62 = vector.broadcast %cst_21 : f32 to vector<8x100xf32>
    %63 = arith.mulf %62, %7 : vector<8x100xf32>
    %cst_22 = arith.constant 1.000000e+00 : f32
    %64 = vector.broadcast %cst_22 : f32 to vector<8x100xf32>
    %65 = arith.addf %63, %64 : vector<8x100xf32>
    %66 = arith.divf %65, %53 : vector<8x100xf32>
    %cst_23 = arith.constant 2.000000e+00 : f32
    %67 = vector.broadcast %cst_23 : f32 to vector<8x100xf32>
    %68 = arith.mulf %67, %7 : vector<8x100xf32>
    %cst_24 = arith.constant 5.000000e+00 : f32
    %69 = vector.broadcast %cst_24 : f32 to vector<8x100xf32>
    %70 = arith.addf %68, %69 : vector<8x100xf32>
    %71 = arith.divf %70, %58 : vector<8x100xf32>
    %72 = arith.addf %66, %71 : vector<8x100xf32>
    %cst_25 = arith.constant 4.000000e+00 : f32
    %73 = vector.broadcast %cst_25 : f32 to vector<8x100xf32>
    %74 = arith.addf %7, %73 : vector<8x100xf32>
    %cst_26 = arith.constant 1.000000e+00 : f32
    %75 = vector.broadcast %cst_26 : f32 to vector<8x100xf32>
    %76 = arith.divf %75, %74 : vector<8x100xf32>
    %77 = math.log %74 : vector<8x100xf32>
    %78 = arith.mulf %76, %76 : vector<8x100xf32>
    %cst_27 = arith.constant 5.000000e-01 : f32
    %79 = vector.broadcast %cst_27 : f32 to vector<8x100xf32>
    %80 = arith.subf %74, %79 : vector<8x100xf32>
    %81 = arith.mulf %80, %77 : vector<8x100xf32>
    %82 = arith.subf %81, %74 : vector<8x100xf32>
    %cst_28 = arith.constant 0.918938517 : f32
    %83 = vector.broadcast %cst_28 : f32 to vector<8x100xf32>
    %84 = arith.addf %82, %83 : vector<8x100xf32>
    %cst_29 = arith.constant 7.93650805E-4 : f32
    %85 = vector.broadcast %cst_29 : f32 to vector<8x100xf32>
    %86 = arith.mulf %78, %85 : vector<8x100xf32>
    %cst_30 = arith.constant 0.00277777785 : f32
    %87 = vector.broadcast %cst_30 : f32 to vector<8x100xf32>
    %88 = arith.subf %87, %86 : vector<8x100xf32>
    %89 = arith.mulf %78, %88 : vector<8x100xf32>
    %cst_31 = arith.constant 0.0833333358 : f32
    %90 = vector.broadcast %cst_31 : f32 to vector<8x100xf32>
    %91 = arith.subf %90, %89 : vector<8x100xf32>
    %92 = arith.mulf %76, %91 : vector<8x100xf32>
    %93 = arith.addf %84, %92 : vector<8x100xf32>
    %cst_32 = arith.constant 5.000000e-01 : f32
    %94 = vector.broadcast %cst_32 : f32 to vector<8x100xf32>
    %95 = arith.mulf %94, %76 : vector<8x100xf32>
    %96 = arith.subf %77, %95 : vector<8x100xf32>
    %cst_33 = arith.constant 0.0039682542 : f32
    %97 = vector.broadcast %cst_33 : f32 to vector<8x100xf32>
    %98 = arith.mulf %78, %97 : vector<8x100xf32>
    %cst_34 = arith.constant 0.00833333377 : f32
    %99 = vector.broadcast %cst_34 : f32 to vector<8x100xf32>
    %100 = arith.subf %99, %98 : vector<8x100xf32>
    %101 = arith.mulf %78, %100 : vector<8x100xf32>
    %cst_35 = arith.constant 0.0833333358 : f32
    %102 = vector.broadcast %cst_35 : f32 to vector<8x100xf32>
    %103 = arith.subf %102, %101 : vector<8x100xf32>
    %104 = arith.mulf %78, %103 : vector<8x100xf32>
    %105 = arith.subf %96, %104 : vector<8x100xf32>
    %106 = arith.subf %93, %61 : vector<8x100xf32>
    %107 = arith.subf %105, %72 : vector<8x100xf32>
    %cst_36 = arith.constant dense<0.000000e+00> : vector<8xf32>
    %108 = vector.multi_reduction <add>, %106, %cst_36 [1] : vector<8x100xf32> to vector<8xf32>
    %109 = vector.shape_cast %108 : vector<8xf32> to vector<8x1xf32>
    %110 = arith.subf %36, %109 : vector<8x1xf32>
    %cst_37 = arith.constant 359.134216 : f32
    %111 = vector.broadcast %cst_37 : f32 to vector<8x1xf32>
    %112 = arith.subf %110, %111 : vector<8x1xf32>
    %cst_38 = arith.constant 1.000000e+00 : f32
    %113 = vector.broadcast %cst_38 : f32 to vector<8x100xf32>
    %114 = arith.subf %7, %113 : vector<8x100xf32>
    %115 = vector.broadcast %48 : vector<8x1xf32> to vector<8x100xf32>
    %116 = arith.subf %107, %115 : vector<8x100xf32>
    %117 = arith.mulf %114, %116 : vector<8x100xf32>
    %cst_39 = arith.constant dense<0.000000e+00> : vector<8xf32>
    %118 = vector.multi_reduction <add>, %117, %cst_39 [1] : vector<8x100xf32> to vector<8xf32>
    %119 = vector.shape_cast %118 : vector<8xf32> to vector<8x1xf32>
    %120 = arith.addf %112, %119 : vector<8x1xf32>
    %121 = arith.mulf %2, %50 : vector<8x1xf32>
    %122 = vector.shape_cast %121 : vector<8x1xf32> to vector<1x8x1xf32>
    %cst_40 = arith.constant dense<0.000000e+00> : vector<1xf32>
    %123 = vector.multi_reduction <add>, %122, %cst_40 [1, 2] : vector<1x8x1xf32> to vector<1xf32>
    %124 = vector.shape_cast %123 : vector<1xf32> to vector<1x1x1xf32>
    %125 = vector.extract %124[0, 0, 0] : f32 from vector<1x1x1xf32>
    %126 = vector.broadcast %125 : f32 to vector<1x1xf32>
    %127 = vector.shape_cast %2 : vector<8x1xf32> to vector<1x8x1xf32>
    %cst_41 = arith.constant dense<0.000000e+00> : vector<1xf32>
    %128 = vector.multi_reduction <add>, %127, %cst_41 [1, 2] : vector<1x8x1xf32> to vector<1xf32>
    %129 = vector.shape_cast %128 : vector<1xf32> to vector<1x1x1xf32>
    %130 = vector.extract %129[0, 0, 0] : f32 from vector<1x1x1xf32>
    %131 = vector.broadcast %130 : f32 to vector<1x1xf32>
    %cst_42 = arith.constant 9.99999997E-7 : f32
    %132 = vector.broadcast %cst_42 : f32 to vector<1x1xf32>
    %133 = arith.addf %131, %132 : vector<1x1xf32>
    %cst_43 = arith.constant 1.000000e+00 : f32
    %134 = vector.broadcast %cst_43 : f32 to vector<8x1xf32>
    %135 = arith.subf %134, %2 : vector<8x1xf32>
    %136 = arith.mulf %135, %120 : vector<8x1xf32>
    %137 = vector.shape_cast %136 : vector<8x1xf32> to vector<1x8x1xf32>
    %cst_44 = arith.constant dense<0.000000e+00> : vector<1xf32>
    %138 = vector.multi_reduction <add>, %137, %cst_44 [1, 2] : vector<1x8x1xf32> to vector<1xf32>
    %139 = vector.shape_cast %138 : vector<1xf32> to vector<1x1x1xf32>
    %140 = vector.extract %139[0, 0, 0] : f32 from vector<1x1x1xf32>
    %141 = vector.broadcast %140 : f32 to vector<1x1xf32>
    %cst_45 = arith.constant 1.000000e+00 : f32
    %142 = vector.broadcast %cst_45 : f32 to vector<8x1xf32>
    %143 = arith.subf %142, %2 : vector<8x1xf32>
    %144 = vector.shape_cast %143 : vector<8x1xf32> to vector<1x8x1xf32>
    %cst_46 = arith.constant dense<0.000000e+00> : vector<1xf32>
    %145 = vector.multi_reduction <add>, %144, %cst_46 [1, 2] : vector<1x8x1xf32> to vector<1xf32>
    %146 = vector.shape_cast %145 : vector<1xf32> to vector<1x1x1xf32>
    %147 = vector.extract %146[0, 0, 0] : f32 from vector<1x1x1xf32>
    %148 = vector.broadcast %147 : f32 to vector<1x1xf32>
    %cst_47 = arith.constant 9.99999997E-7 : f32
    %149 = vector.broadcast %cst_47 : f32 to vector<1x1xf32>
    %150 = arith.addf %148, %149 : vector<1x1xf32>
    %151 = arith.divf %126, %133 : vector<1x1xf32>
    %c0_48 = arith.constant 0 : index
    %c0_49 = arith.constant 0 : index
    %152 = vector.load %arg3[%c0_48, %c0_49] : memref<1x1xf32, #tpu.memory_space<vmem>>, vector<1x1xf32>
    tpu.vector_store %arg3[%c0_48, %c0_49], %151 {strides = array<i32>} : memref<1x1xf32, #tpu.memory_space<vmem>>, vector<1x1xf32>,
    %153 = arith.divf %141, %150 : vector<1x1xf32>
    %c0_50 = arith.constant 0 : index
    %c0_51 = arith.constant 0 : index
    %154 = vector.load %arg4[%c0_50, %c0_51] : memref<1x1xf32, #tpu.memory_space<vmem>>, vector<1x1xf32>
    tpu.vector_store %arg4[%c0_50, %c0_51], %153 {strides = array<i32>} : memref<1x1xf32, #tpu.memory_space<vmem>>, vector<1x1xf32>,
    return
  }
}

</mosaic_0001>

<bundles_post_ra>
// kernel: tpu_custom_call.1
= control target key start
LH: loop header
LB: loop body
LE: loop exit
PB: predicated region body
PF: predicated region fallthrough
CT: control target
= control target key end

     0   :  { %10 = vsyncpa [#allocation3], 0  ;;  %s384_s0 = inlined_call_operand.vmem [shape: f32[8,100], index: 0, kind: input, shape index: {}]   ;;  %s385_s1 = inlined_call_operand.vmem [shape: s32[8,1], index: 1, kind: input, shape index: {}]   ;;  %s386_s2 = inlined_call_operand.vmem [shape: f32[8,1], index: 2, kind: input, shape index: {}]   ;;  %s387_s3 = inlined_call_operand.hbm [shape: f32[1,1], index: 3, kind: output, shape index: {0}]   ;;  %s388_s4 = inlined_call_operand.hbm [shape: f32[1,1], index: 4, kind: output, shape index: {1}]  }
   0x1   :  { %v18_v0 = vld [vmem:[%s384_s0] sm:$0xff] }
   0x2   :  { %11 = vsyncpa [#allocation5], 0  ;;  %v21_v1 = vmin.f32 %v18_v0, 40.0  ;;  %v298_v2 = vmov 0   ;;  %vm25_vm0 = vcmask 818176   ;;  %v19_v7 = vld [vmem:[%s385_s1] sm:$0xff]  ;;  %v29_v29 = vlaneseq }
   0x3   :  { %225 = vset.pattern.permute.xlu0 %v298_v2  ;;  %v299_v44 = vmov 0.0   ;;  %vm124_vm2 = vcmask 7168   ;;  %s300_s22 = smov [#allocation2]   ;;  %vm175_vm3 = vcmask 0  }
   0x4   :  { %v22_v3 = vmul.f32 1.442695, %v21_v1  ;;  %v30_v35 = vand.u32 127, %v29_v29  ;;  %s186_s23 = sshll.u32 %s300_s22, 4  ;;  %s187_s23 = int_to_ptr.vmem [resolvable:$true] %s186_s23 }
   0x5   :  { %s250_s24 = scalar_lea.vmem %s187_s23, 16  ;;  %s254_s25 = scalar_lea.vmem %s187_s23, 32 }
   0x6   :  { %226 = vpow2.f32 %v22_v3  ;;  %p251_p0 = scmp.ne.s32.totalorder %s187_s23, %s250_s24  ;;  %p255_p1 = scmp.lt.s32.totalorder %s187_s23, %s187_s23 }
   0x7   :  { %p256_p2 = scmp.lt.s32.totalorder %s254_s25, %s250_s24 }
   0x9   :  { %p257_p3 = por %p256_p2, %p255_p1 }
   0xb   :  { %p258_p4 = pnand %p257_p3, %p251_p0 }
  0x10   :  { %v227_v4 = vpop.eup %226 }
  0x11   :  { %v330_v5 = vadd.f32 1.0, %v227_v4 }
  0x13   :  { %v26_v6 = vsel %vm25_vm0, %v330_v5, 0.0  ;;  %v85_v8 = vadd.f32 4.0, %v330_v5  ;;  %v67_v10 = vadd.f32 1.0, %v330_v5  ;;  %v69_v11 = vadd.f32 2.0, %v330_v5 }
  0x14   :  { %27 = vadd.xlane.f32.xlu0 %v26_v6  ;;  %v70_v12 = vadd.f32 3.0, %v330_v5  ;;  %v77_v36 = vmul.f32 2.0, %v330_v5 }
  0x15   :  { %228 = vrcp.f32 %v85_v8  ;;  %v68_v14 = vmul.f32 %v67_v10, %v330_v5  ;;  %v210_v19 = vadd.f32 -0.5, %v85_v8 }
  0x16   :  { %230 = vlog2.f32 %v85_v8  ;;  %v71_v15 = vmul.f32 %v70_v12, %v69_v11  ;;  %v78_v42 = vadd.f32 1.0, %v77_v36  ;;  %v81_v46 = vadd.f32 5.0, %v77_v36 }
  0x17   :  { %232 = vlog2.f32 %v68_v14 }
  0x18   :  { %234 = vlog2.f32 %v71_v15 }
  0x19   :  { %236 = vrcp.f32 %v68_v14 }
  0x1a   :  { %238 = vrcp.f32 %v71_v15 }
  0x1f   :  { %v229_v9 = vpop.eup %228 }
  0x20   :  { %v90_v13 = vmul.f32 %v229_v9, %v229_v9  ;;  %v231_v17 = vpop.eup %230  ;;  %v101_v47 = vmul.f32 0.5, %v229_v9 }
  0x21   :  { %v89_v18 = vmul.f32 0.6931472, %v231_v17  ;;  %v233_v24 = vpop.eup %232 }
  0x22   :  { %v95_v16 = vmul.f32 0.0007936508, %v90_v13  ;;  %v103_v23 = vmul.f32 0.003968254, %v90_v13  ;;  %v235_v27 = vpop.eup %234  ;;  %v73_v31 = vmul.f32 0.6931472, %v233_v24 }
  0x23   :  { %v92_v21 = vmul.f32 %v210_v19, %v89_v18  ;;  %v75_v32 = vmul.f32 0.6931472, %v235_v27  ;;  %v237_v41 = vpop.eup %236  ;;  %v102_v59 = vsub.f32 %v89_v18, %v101_v47  ;;  %v212_v18 = vadd.f32 -1.0, %v330_v5 }
  0x24   :  { %v96_v20 = vsub.f32 0.0027777778, %v95_v16  ;;  %v104_v30 = vsub.f32 0.008333334, %v103_v23  ;;  %v239_v43 = vpop.eup %238  ;;  %v80_v57 = vmul.f32 %v237_v41, %v78_v42  ;;  %v20_v23 = vld [vmem:[%s386_s2] sm:$0xff] }
  0x25   :  { %v93_v25 = vsub.f32 %v92_v21, %v85_v8  ;;  %v76_v38 = vadd.f32 %v75_v32, %v73_v31  ;;  %v83_v58 = vmul.f32 %v239_v43, %v81_v46  ;;  %v136_v24 = vsel %vm124_vm2, %v20_v23, 0.0 }
  0x26   :  { %v97_v22 = vmul.f32 %v96_v20, %v90_v13  ;;  %v105_v37 = vmul.f32 %v104_v30, %v90_v13  ;;  %v148_v32 = vsub.f32 1.0, %v20_v23 }
  0x27   :  { %v94_v33 = vadd.f32 0.9189385, %v93_v25  ;;  %v84_v3 = vadd.f32 %v83_v58, %v80_v57 }
  0x28   :  { %v98_v26 = vsub.f32 0.083333336, %v97_v22  ;;  %v106_v48 = vsub.f32 0.083333336, %v105_v37 }
  0x2a   :  { %32 = vperm.xlu0 %225, %v19_v7   ;;  %v99_v34 = vmul.f32 %v229_v9, %v98_v26  ;;  %v107_v60 = vmul.f32 %v106_v48, %v90_v13 }
  0x2c   :  { %v100_v39 = vadd.f32 %v99_v34, %v94_v33  ;;  %v108_v4 = vsub.f32 %v102_v59, %v107_v60 }
  0x2e   :  { %v109_v51 = vsub.f32 %v100_v39, %v76_v38  ;;  %v110_v12 = vsub.f32 %v108_v4, %v84_v3  ;;  %v161_v38 = vsel %vm124_vm2, %v148_v32, 0.0 }
  0x30   :  { %v111_v61 = vsel %vm25_vm0, %v109_v51, 0.0 }
  0xa1   :  { %v28_v28 = vpop.xlane.xlu0 %27 }
  0xa2   :  { %240 = vlog2.f32 %v28_v28  ;;  %v209_v54 = vadd.f32 -0.5, %v28_v28 }
  0xa3   :  { %242 = vrcp.f32 %v28_v28 }
  0xa9   :  { %v33_v40 = vpop.permute.xlu0 %32 }
  0xaa   :  { %vm34_vm1 = vcmp.eq.s32.totalorder %v30_v35, %v33_v40 }
  0xab   :  { %v208_v45 = vsel %vm34_vm1, 1.0, %v299_v44 }
  0xac   :  { %v241_v49 = vpop.eup %240  ;;  %v37_v50 = vmul.f32 %v208_v45, %v330_v5 }
  0xad   :  { %v243_v52 = vpop.eup %242  ;;  %v42_v53 = vmul.f32 0.6931472, %v241_v49 }
  0xae   :  { %v38_v55 = vsel %vm25_vm0, %v37_v50, 0.0  ;;  %v45_v56 = vmul.f32 %v243_v52, %v243_v52  ;;  %v56_v6 = vmul.f32 0.5, %v243_v52 }
  0xaf   :  { %39 = vadd.xlane.f32.xlu1 %v38_v55  ;;  %v47_v63 = vmul.f32 %v209_v54, %v42_v53 }
  0xb0   :  { %v58_v62 = vmul.f32 0.003968254, %v45_v56  ;;  %v50_v0 = vmul.f32 0.0007936508, %v45_v56  ;;  %v57_v14 = vsub.f32 %v42_v53, %v56_v6 }
  0xb1   :  { %v48_v8 = vsub.f32 %v47_v63, %v28_v28 }
  0xb2   :  { %v59_v1 = vsub.f32 0.008333334, %v58_v62  ;;  %v51_v2 = vsub.f32 0.0027777778, %v50_v0 }
  0xb3   :  { %112 = vadd.xlane.f32.xlu1 %v111_v61  ;;  %v49_v13 = vadd.f32 0.9189385, %v48_v8 }
  0xb4   :  { %v60_v7 = vmul.f32 %v59_v1, %v45_v56  ;;  %v52_v9 = vmul.f32 %v51_v2, %v45_v56 }
  0xb6   :  { %v61_v10 = vsub.f32 0.083333336, %v60_v7  ;;  %v53_v11 = vsub.f32 0.083333336, %v52_v9 }
  0xb8   :  { %v62_v15 = vmul.f32 %v61_v10, %v45_v56  ;;  %v54_v16 = vmul.f32 %v243_v52, %v53_v11 }
  0xba   :  { %v63_v17 = vsub.f32 %v57_v14, %v62_v15  ;;  %v55_v19 = vadd.f32 %v54_v16, %v49_v13 }
  0xbc   :  { %v117_v20 = vsub.f32 %v110_v12, %v63_v17 }
  0xbe   :  { %v118_v21 = vmul.f32 %v212_v18, %v117_v20 }
  0xc0   :  { %v119_v22 = vsel %vm25_vm0, %v118_v21, 0.0 }
  0xc1   :  { %120 = vadd.xlane.f32.xlu1 %v119_v22 }
  0xc5   :  { %137 = vadd.xlane.f32.xlu1 %v136_v24 }
 0x13c   :  { %v40_v25 = vpop.xlane.xlu1 %39 }
 0x13d   :  { %244 = vlog2.f32 %v40_v25 }
 0x140   :  { %v113_v26 = vpop.xlane.xlu1 %112 }
 0x141   :  { %v114_v5 = vsub.f32 %v55_v19, %v113_v26 }
 0x143   :  { %v211_v31 = vadd.f32 -359.13422, %v114_v5 }
 0x147   :  { %v245_v27 = vpop.eup %244 }
 0x148   :  { %v65_v28 = vmul.f32 0.6931472, %v245_v27 }
 0x14a   :  { %v66_v29 = vsub.f32 %v42_v53, %v65_v28 }
 0x14c   :  { %v123_v30 = vmul.f32 %v66_v29, %v20_v23 }
 0x14e   :  { %v121_v33 = vpop.xlane.xlu1 %120  ;;  %v125_v34 = vsel %vm124_vm2, %v123_v30, 0.0 }
 0x14f   :  { %v122_v35 = vadd.f32 %v211_v31, %v121_v33  ;;  %126 = vadd.xlane.f32.xlu1 %v125_v34 }
 0x151   :  { %v149_v36 = vmul.f32 %v148_v32, %v122_v35 }
 0x152   :  { %v138_v39 = vpop.xlane.xlu1 %137 }
 0x153   :  { %v150_v37 = vsel %vm124_vm2, %v149_v36, 0.0  ;;  %v139_v40 = vrot.slane %v138_v39, 4 }
 0x154   :  { %151 = vadd.xlane.f32.xlu1 %v150_v37 }
 0x155   :  { %v140_v41 = vadd.f32 %v139_v40, %v138_v39 }
 0x157   :  { %v141_v42 = vrot.slane %v140_v41, 2 }
 0x158   :  { %162 = vadd.xlane.f32.xlu1 %v161_v38 }
 0x159   :  { %v142_v46 = vadd.f32 %v141_v42, %v140_v41 }
 0x15b   :  { %v143_v52 = vrot.slane %v142_v46, 1 }
 0x15d   :  { %v144_v59 = vadd.f32 %v143_v52, %v142_v46 }
 0x1dc   :  { %v127_v43 = vpop.xlane.xlu1 %126 }
 0x1dd   :  { %v128_v44 = vrot.slane %v127_v43, 4 }
 0x1df   :  { %v129_v45 = vadd.f32 %v128_v44, %v127_v43 }
 0x1e1   :  { %v130_v47 = vrot.slane %v129_v45, 2  ;;  %v152_v48 = vpop.xlane.xlu1 %151 }
 0x1e2   :  { %v153_v49 = vrot.slane %v152_v48, 4 }
 0x1e3   :  { %v131_v50 = vadd.f32 %v130_v47, %v129_v45 }
 0x1e4   :  { %v154_v51 = vadd.f32 %v153_v49, %v152_v48 }
 0x1e5   :  { %v163_v53 = vpop.xlane.xlu1 %162  ;;  %v132_v54 = vrot.slane %v131_v50, 1 }
 0x1e6   :  { %v155_v55 = vrot.slane %v154_v51, 2  ;;  %v164_v56 = vrot.slane %v163_v53, 4 }
 0x1e7   :  { %v133_v57 = vadd.f32 %v132_v54, %v131_v50 }
 0x1e8   :  { %v165_v58 = vadd.f32 %v164_v56, %v163_v53  ;;  %v156_v60 = vadd.f32 %v155_v55, %v154_v51 }
 0x1e9   :  { %213 = vpush %v133_v57 }
 0x1ea   :  { %v166_v61 = vrot.slane %v165_v58, 2  ;;  %215 = vpush %v144_v59  ;;  %v157_v62 = vrot.slane %v156_v60, 1 }
 0x1ec   :  { %v167_v63 = vadd.f32 %v166_v61, %v165_v58  ;;  %v158_v0 = vadd.f32 %v157_v62, %v156_v60 }
 0x1ee   :  { %217 = vpush %v158_v0  ;;  %v168_v1 = vrot.slane %v167_v63, 1 }
 0x1f0   :  { %v169_v2 = vadd.f32 %v168_v1, %v167_v63 }
 0x1f2   :  { %219 = vpush %v169_v2 }
 0x21a   :  { %s214_s2 = spop %213 }
 0x21b   :  { %s216_s19 = spop %215  ;;  %v135_v9 = vstv %s214_s2 }
 0x21c   :  { %v146_v3 = vstv %s216_s19 }
 0x21d   :  { %v147_v4 = vadd.f32 1e-06, %v146_v3 }
 0x21f   :  { %246 = vrcp.f32 %v147_v4  ;;  %s355_s20 = spop %217 }
 0x223   :  { %s220_s21 = spop %219 }
 0x224   :  { %v171_v6 = vstv %s220_s21 }
 0x225   :  { %v172_v7 = vadd.f32 1e-06, %v171_v6 }
 0x227   :  { %248 = vrcp.f32 %v172_v7 }
 0x229   :  { %v247_v8 = vpop.eup %246 }
 0x22a   :  { %v174_v10 = vmul.f32 %v247_v8, %v135_v9 }
 0x22c   :  { %176 = vst.msk [vmem:[#allocation2] sm:$0x1] %vm175_vm3, %v174_v10 }
 0x22d   :  { %261 = shalt.err (!%p258_p4)
}
 0x22e   :  { %s262_s28 = scalar_lea.hbm %s387_s3, 16 }
 0x22f   :  { %p263_p5 = scmp.ne.s32.totalorder %s387_s3, %s262_s28  ;;  %p266_p6 = scmp.lt.u32.totalorder %s262_s28, %s387_s3 }
 0x231   :  { %p268_p7 = pnand %p266_p6, %p263_p5 }
 0x233   :  { %271 = shalt.err (!%p268_p7)
}
 0x234   :  { %189 = dma.vmem_to_hbm [thread:$0]  %s187_s23, 16, %s387_s3, [#allocation3]   ;;  %v249_v11 = vpop.eup %248  ;;  %v160_v12 = vstv %s355_s20 }
 0x235   :  { %s301_s9 = smov [#allocation4]   ;;  %v178_v14 = vmul.f32 %v249_v11, %v160_v12 }
 0x236   :  { %s196_s10 = sshll.u32 %s301_s9, 4  ;;  %s197_s10 = int_to_ptr.vmem [resolvable:$true] %s196_s10 }
 0x237   :  { %179 = vst.msk [vmem:[#allocation4] sm:$0x1] %vm175_vm3, %v178_v14  ;;  %s272_s11 = scalar_lea.vmem %s197_s10, 16  ;;  %s276_s12 = scalar_lea.vmem %s197_s10, 32 }
 0x238   :  { %p273_p8 = scmp.ne.s32.totalorder %s197_s10, %s272_s11  ;;  %p277_p9 = scmp.lt.s32.totalorder %s197_s10, %s197_s10 }
 0x239   :  { %p278_p10 = scmp.lt.s32.totalorder %s276_s12, %s272_s11 }
 0x23b   :  { %p279_p11 = por %p278_p10, %p277_p9 }
 0x23d   :  { %p280_p12 = pnand %p279_p11, %p273_p8 }
 0x23f   :  { %283 = shalt.err (!%p280_p12)
}
 0x240   :  { %s284_s3 = scalar_lea.hbm %s388_s4, 16 }
 0x241   :  { %p285_p13 = scmp.ne.s32.totalorder %s388_s4, %s284_s3  ;;  %p288_p0 = scmp.lt.u32.totalorder %s284_s3, %s388_s4 }
 0x243   :  { %p290_p1 = pnand %p288_p0, %p285_p13 }
 0x245   :  { %293 = shalt.err (!%p290_p1)
}
 0x246   :  { %199 = dma.vmem_to_hbm [thread:$0]  %s197_s10, 16, %s388_s4, [#allocation5]  }
 0x247   :  { %294 = dma.done.wait [#allocation3], 16  }
 0x248   :  { %295 = vsyncadd [#allocation3], 4294967280 }
 0x249   :  { %296 = dma.done.wait [#allocation5], 16  }
 0x24a   :  { %297 = vsyncadd [#allocation5], 4294967280 }
 0x24b   :  { %206 = vsyncpa [#allocation3], 1 }
 0x24c   :  { %207 = vsyncpa [#allocation5], 1 }

</bundles_post_ra>
